<compile_context>
chip_gen: v5e
topology: v5e:2x2
jax: 0.10.0
libtpu: 0.0.40
codegen_flags: <defaults>
</compile_context>

<pallas_src>
import functools

import numpy as np
import jax
import jax.numpy as jnp
from jax.experimental import pallas as pl
from jax.experimental.pallas import tpu as pltpu


def _pick_batch_tile(n, cout, cin_g, hw):
    """Largest divisor of N that packs ~32 (batch, channel) rows on the sublane axis
    while keeping the (double-buffered) per-step input block under ~8 MiB of VMEM."""
    cap = max(1, 32 // max(cout, 1))
    while cap > 1 and cin_g * cap * cout * hw * 4 * 2 > (8 << 20):
        cap -= 1
    best = 1
    for d in range(1, min(n, cap) + 1):
        if n % d == 0:
            best = d
    return best


def _cbr_kernel(x_ref, w_ref, b_ref, bw_ref, bb_ref, ml_ref, mr_ref, o_ref, *,
                cin_g, bt, cout, H, W, act, use_mxu):
    """One grid step == `bt` batch elements, packed as rows = bt*cout sublanes.

    x_ref : VMEM (1, cin_g, rows, H*W)  input, channel-expanded + batch-packed
    w_ref : VMEM (cin_g*9, rows, 1)     grouped 3x3 weights (BN scale folded in), per-tap columns
    b_ref : VMEM (rows, 1)              folded BN bias (beta - mean*scale), batch-tiled
    bw_ref: VMEM (rows, rows) if use_mxu else (cout, cout, 1)   1x1 balance weights
    bb_ref: VMEM (rows, 1)    if use_mxu else (cout, 1)         1x1 balance bias
    ml_ref: VMEM (1, H*W)               mask: output column > 0      (for dw = -1)
    mr_ref: VMEM (1, H*W)               mask: output column < W - 1  (for dw = +1)
    o_ref : VMEM (1, rows, H*W)
    """
    HW = H * W
    P = W + 1                      # max |flat shift| of a 3x3 tap
    rows = bt * cout

    bn_b = b_ref[...]              # (rows, 1)
    mask_l = ml_ref[...]           # (1, HW)
    mask_r = mr_ref[...]           # (1, HW)
    zpad = jnp.zeros((rows, P), jnp.float32)

    # grouped 3x3 conv (stride=1, pad=1): 9 static lane-shifted MACs on the full
    # packed tile (batch*channels on sublanes, spatial on lanes).  The three taps
    # of each column offset dw are summed first so each W-edge mask is applied once.
    acc = None
    for icl in range(cin_g):
        xc = x_ref[0, icl].astype(jnp.float32)                # (rows, HW)
        xp = jnp.concatenate([zpad, xc, zpad], axis=1)        # (rows, HW + 2P)
        for dw in (-1, 0, 1):
            part = None
            for dh in (-1, 0, 1):
                s = dh * W + dw
                t = (dh + 1) * 3 + (dw + 1)
                tap = xc if s == 0 else xp[:, P + s:P + s + HW]   # (rows, HW)
                term = w_ref[icl * 9 + t] * tap
                part = term if part is None else part + term
            if dw == -1:
                part = part * mask_l
            elif dw == 1:
                part = part * mask_r
            acc = part if acc is None else acc + part

    # folded BatchNorm bias (+ ReLU); scale already folded into the weights
    y = acc + bn_b
    if act:
        y = jnp.maximum(y, 0.0)

    # 1x1 "balance" conv with bias (full channel mix inside each batch element)
    if use_mxu:
        z = jax.lax.dot_general(bw_ref[...], y, (((1,), (0,)), ((), ())),
                                preferred_element_type=jnp.float32) + bb_ref[...]
    else:
        bal_b = bb_ref[...]                                     # (cout, 1)
        zs = []
        for b in range(bt):
            zb = None
            for c in range(cout):
                r = b * cout + c
                term = bw_ref[c] * y[r:r + 1, :]                # (cout,1)*(1,HW)
                zb = term if zb is None else zb + term
            zs.append(zb + bal_b)
        z = zs[0] if bt == 1 else jnp.concatenate(zs, axis=0)   # (rows, HW)

    o_ref[0] = z.astype(o_ref.dtype)


def cbr_forward(x, conv_w, bn_gamma, bn_beta, bn_mean, bn_var,
                bal_w, bal_b, *, act=True, eps=1e-5):
    N, cin, H, W = x.shape
    cout = conv_w.shape[0]
    # module logic: groups = in_c if in_c < out_c else out_c  (== min(in_c, out_c))
    groups = min(cin, cout)
    cin_g = cin // groups
    cout_g = cout // groups
    assert conv_w.shape == (cout, cin_g, 3, 3), "only the module-default 3x3 conv is supported"
    # TODO(synk): kernel_size/stride/dilation other than the module defaults (3,1,1,1) are not implemented.
    HW = H * W

    # ---- inference-mode BN folded into the conv: scale -> weights, shift -> bias ----
    scale = bn_gamma.astype(jnp.float32) / jnp.sqrt(bn_var.astype(jnp.float32) + eps)
    bn_bias = bn_beta.astype(jnp.float32) - bn_mean.astype(jnp.float32) * scale
    w_fold = conv_w.astype(jnp.float32) * scale[:, None, None, None]

    bt = _pick_batch_tile(N, cout, cin_g, HW)
    rows = bt * cout
    nsteps = N // bt

    # ---- layout plumbing: batch x channel packed on sublanes (b-outer, c-inner) ----
    x_f = x.astype(jnp.float32).reshape(N, cin, HW)
    if cin_g == 1 and cout_g == 1:
        # depthwise (in_c == out_c): pure reshape, no data movement
        x_exp = x_f.reshape(nsteps, 1, rows, HW)
    else:
        # expand channels so packed row (b, oc) sees its group's inputs at [:, icl, ...]
        oc_group = np.arange(cout) // cout_g
        chan = jnp.asarray(oc_group[None, :] * cin_g + np.arange(cin_g)[:, None])   # (cin_g, cout)
        x_exp = (x_f[:, chan, :]                                                     # (N, cin_g, cout, HW)
                 .reshape(nsteps, bt, cin_g, cout, HW)
                 .transpose(0, 2, 1, 3, 4)
                 .reshape(nsteps, cin_g, rows, HW))

    # per-tap weight columns tiled across the packed batches
    w_cols = jnp.transpose(w_fold, (1, 2, 3, 0)).reshape(cin_g * 9, cout)
    w_cols = jnp.tile(w_cols, (1, bt)).reshape(cin_g * 9, rows, 1)
    bn_b = jnp.tile(bn_bias, (bt,)).reshape(rows, 1)

    wb = bal_w.astype(jnp.float32)[:, :, 0, 0]                  # (cout, cout)  [oc, c]
    use_mxu = rows >= 16
    if use_mxu:
        bw = jnp.kron(jnp.eye(bt, dtype=jnp.float32), wb)       # block-diagonal (rows, rows)
        bb = jnp.tile(bal_b.astype(jnp.float32), (bt,)).reshape(rows, 1)
        bw_spec = pl.BlockSpec((rows, rows), lambda n: (0, 0))
        bb_spec = pl.BlockSpec((rows, 1), lambda n: (0, 0))
    else:
        bw = jnp.transpose(wb).reshape(cout, cout, 1)            # bw[c, oc] = W[oc, c]
        bb = bal_b.astype(jnp.float32).reshape(cout, 1)
        bw_spec = pl.BlockSpec((cout, cout, 1), lambda n: (0, 0, 0))
        bb_spec = pl.BlockSpec((cout, 1), lambda n: (0, 0))

    # column-boundary masks (trace-time constants, avoids in-kernel integer mod)
    col = np.arange(HW) % W
    mask_l = jnp.asarray(col >= 1, jnp.float32).reshape(1, HW)
    mask_r = jnp.asarray(col <= W - 2, jnp.float32).reshape(1, HW)

    kernel = functools.partial(_cbr_kernel, cin_g=cin_g, bt=bt, cout=cout,
                               H=H, W=W, act=act, use_mxu=use_mxu)

    out_flat = pl.pallas_call(
        kernel,
        out_shape=jax.ShapeDtypeStruct((nsteps, rows, HW), jnp.float32),
        grid_spec=pltpu.PrefetchScalarGridSpec(
            num_scalar_prefetch=0,
            grid=(nsteps,),
            in_specs=[
                pl.BlockSpec((1, cin_g, rows, HW), lambda n: (n, 0, 0, 0)),
                pl.BlockSpec((cin_g * 9, rows, 1), lambda n: (0, 0, 0)),
                pl.BlockSpec((rows, 1), lambda n: (0, 0)),
                bw_spec,
                bb_spec,
                pl.BlockSpec((1, HW), lambda n: (0, 0)),
                pl.BlockSpec((1, HW), lambda n: (0, 0)),
            ],
            out_specs=pl.BlockSpec((1, rows, HW), lambda n: (n, 0, 0)),
        ),
        compiler_params=pltpu.CompilerParams(
            dimension_semantics=("parallel",)),
    )(x_exp, w_cols, bn_b, bw, bb, mask_l, mask_r)

    # rows are (b, c)-packed b-outer, so this is a pure reshape back to NCHW
    return out_flat.reshape(N, cout, H, W)


def cbr_reference(x, conv_w, bn_gamma, bn_beta, bn_mean, bn_var,
                  bal_w, bal_b, *, act=True, eps=1e-5):
    """Pure-JAX reference (lax convs) for correctness checking."""
    cin = x.shape[1]
    cout = conv_w.shape[0]
    groups = min(cin, cout)
    y = jax.lax.conv_general_dilated(
        x, conv_w, window_strides=(1, 1), padding=((1, 1), (1, 1)),
        dimension_numbers=('NCHW', 'OIHW', 'NCHW'),
        feature_group_count=groups)
    scale = bn_gamma / jnp.sqrt(bn_var + eps)
    bias = bn_beta - bn_mean * scale
    y = y * scale[None, :, None, None] + bias[None, :, None, None]
    if act:
        y = jnp.maximum(y, 0.0)
    z = jax.lax.conv_general_dilated(
        y, bal_w, window_strides=(1, 1), padding=((0, 0), (0, 0)),
        dimension_numbers=('NCHW', 'OIHW', 'NCHW'))
    return z + bal_b[None, :, None, None]


if __name__ == "__main__":
    # small shapes consistent with the module: in_c == out_c == 4 -> groups = 4 (depthwise)
    N, C, H, W = 2, 4, 16, 16
    in_c = out_c = C
    groups = out_c  # in_c == out_c branch of the module

    key = jax.random.PRNGKey(0)
    k0, k1, k2, k3, k4, k5, k6, k7 = jax.random.split(key, 8)
    x = jax.random.normal(k0, (N, in_c, H, W), jnp.float32)
    conv_w = 0.2 * jax.random.normal(k1, (out_c, in_c // groups, 3, 3), jnp.float32)
    bn_gamma = 1.0 + 0.1 * jax.random.normal(k2, (out_c,), jnp.float32)
    bn_beta = 0.1 * jax.random.normal(k3, (out_c,), jnp.float32)
    bn_mean = 0.1 * jax.random.normal(k4, (out_c,), jnp.float32)
    bn_var = jnp.abs(jax.random.normal(k5, (out_c,), jnp.float32)) + 0.5
    bal_w = 0.3 * jax.random.normal(k6, (out_c, out_c, 1, 1), jnp.float32)
    bal_b = 0.1 * jax.random.normal(k7, (out_c,), jnp.float32)

    out = cbr_forward(x, conv_w, bn_gamma, bn_beta, bn_mean, bn_var,
                      bal_w, bal_b, act=True)
    out = jax.block_until_ready(out)

    ref = cbr_reference(x, conv_w, bn_gamma, bn_beta, bn_mean, bn_var,
                        bal_w, bal_b, act=True)
    assert out.shape == (N, out_c, H, W)
    assert jnp.allclose(out, ref, atol=1e-4, rtol=1e-4), \
        f"max abs err = {float(jnp.max(jnp.abs(out - ref)))}"

    # TODO(synk): BatchNorm2d is implemented in inference mode (running stats folded
    # into scale/bias); training-mode batch statistics are not reproduced.
    print("KERNEL_OK")
</pallas_src>

<mosaic_0001>
module attributes {stable_mosaic.version = 11 : i64} {
  func.func @_cbr_kernel(%arg0: i32, %arg1: memref<1x1x8x256xf32, #tpu.memory_space<vmem>>, %arg2: memref<9x8x1xf32, #tpu.memory_space<vmem>>, %arg3: memref<8x1xf32, #tpu.memory_space<vmem>>, %arg4: memref<4x4x1xf32, #tpu.memory_space<vmem>>, %arg5: memref<4x1xf32, #tpu.memory_space<vmem>>, %arg6: memref<1x256xf32, #tpu.memory_space<vmem>>, %arg7: memref<1x256xf32, #tpu.memory_space<vmem>>, %arg8: memref<1x8x256xf32, #tpu.memory_space<vmem>>) attributes {dimension_semantics = [#tpu.dimension_semantics<parallel>], iteration_bounds = array<i64: 1>, scalar_prefetch = 0 : i64, scratch_operands = 0 : i64, tpu.core_type = #tpu.core_type<tc>, window_params = [{transform_indices = @transform_0, window_bounds = array<i64: 1, 1, 8, 256>}, {pipeline_mode = #tpu.pipeline_mode<synchronous>, transform_indices = @transform_1, window_bounds = array<i64: 9, 8, 1>}, {pipeline_mode = #tpu.pipeline_mode<synchronous>, transform_indices = @transform_2, window_bounds = array<i64: 8, 1>}, {pipeline_mode = #tpu.pipeline_mode<synchronous>, transform_indices = @transform_3, window_bounds = array<i64: 4, 4, 1>}, {pipeline_mode = #tpu.pipeline_mode<synchronous>, transform_indices = @transform_4, window_bounds = array<i64: 4, 1>}, {pipeline_mode = #tpu.pipeline_mode<synchronous>, transform_indices = @transform_5, window_bounds = array<i64: 1, 256>}, {pipeline_mode = #tpu.pipeline_mode<synchronous>, transform_indices = @transform_6, window_bounds = array<i64: 1, 256>}, {transform_indices = @transform_7, window_bounds = array<i64: 1, 8, 256>}]} {
    %c0 = arith.constant 0 : index
    %c0_0 = arith.constant 0 : index
    %0 = vector.load %arg3[%c0, %c0_0] : memref<8x1xf32, #tpu.memory_space<vmem>>, vector<8x1xf32>
    %c0_1 = arith.constant 0 : index
    %c0_2 = arith.constant 0 : index
    %1 = vector.load %arg6[%c0_1, %c0_2] : memref<1x256xf32, #tpu.memory_space<vmem>>, vector<1x256xf32>
    %c0_3 = arith.constant 0 : index
    %c0_4 = arith.constant 0 : index
    %2 = vector.load %arg7[%c0_3, %c0_4] : memref<1x256xf32, #tpu.memory_space<vmem>>, vector<1x256xf32>
    %cst = arith.constant 0.000000e+00 : f32
    %3 = vector.broadcast %cst : f32 to vector<8x17xf32>
    %c0_5 = arith.constant 0 : index
    %c0_6 = arith.constant 0 : index
    %c0_7 = arith.constant 0 : index
    %c0_8 = arith.constant 0 : index
    %4 = vector.load %arg1[%c0_5, %c0_6, %c0_7, %c0_8] : memref<1x1x8x256xf32, #tpu.memory_space<vmem>>, vector<1x1x8x256xf32>
    %5 = vector.shape_cast %4 : vector<1x1x8x256xf32> to vector<8x256xf32>
    %6 = tpu.concatenate %3, %5, %3 in 1 : vector<8x17xf32>, vector<8x256xf32>, vector<8x17xf32> -> vector<8x290xf32>
    %7 = vector.extract_strided_slice %6 {offsets = [0, 0], sizes = [8, 256], strides = [1, 1]} : vector<8x290xf32> to vector<8x256xf32>
    %c0_9 = arith.constant 0 : index
    %c0_10 = arith.constant 0 : index
    %c0_11 = arith.constant 0 : index
    %8 = vector.load %arg2[%c0_9, %c0_10, %c0_11] : memref<9x8x1xf32, #tpu.memory_space<vmem>>, vector<1x8x1xf32>
    %9 = vector.shape_cast %8 : vector<1x8x1xf32> to vector<8x1xf32>
    %10 = vector.broadcast %9 : vector<8x1xf32> to vector<8x256xf32>
    %11 = arith.mulf %10, %7 : vector<8x256xf32>
    %12 = vector.extract_strided_slice %6 {offsets = [0, 16], sizes = [8, 256], strides = [1, 1]} : vector<8x290xf32> to vector<8x256xf32>
    %c3 = arith.constant 3 : index
    %c0_12 = arith.constant 0 : index
    %c0_13 = arith.constant 0 : index
    %13 = vector.load %arg2[%c3, %c0_12, %c0_13] : memref<9x8x1xf32, #tpu.memory_space<vmem>>, vector<1x8x1xf32>
    %14 = vector.shape_cast %13 : vector<1x8x1xf32> to vector<8x1xf32>
    %15 = vector.broadcast %14 : vector<8x1xf32> to vector<8x256xf32>
    %16 = arith.mulf %15, %12 : vector<8x256xf32>
    %17 = arith.addf %11, %16 : vector<8x256xf32>
    %18 = vector.extract_strided_slice %6 {offsets = [0, 32], sizes = [8, 256], strides = [1, 1]} : vector<8x290xf32> to vector<8x256xf32>
    %c6 = arith.constant 6 : index
    %c0_14 = arith.constant 0 : index
    %c0_15 = arith.constant 0 : index
    %19 = vector.load %arg2[%c6, %c0_14, %c0_15] : memref<9x8x1xf32, #tpu.memory_space<vmem>>, vector<1x8x1xf32>
    %20 = vector.shape_cast %19 : vector<1x8x1xf32> to vector<8x1xf32>
    %21 = vector.broadcast %20 : vector<8x1xf32> to vector<8x256xf32>
    %22 = arith.mulf %21, %18 : vector<8x256xf32>
    %23 = arith.addf %17, %22 : vector<8x256xf32>
    %24 = vector.broadcast %1 : vector<1x256xf32> to vector<8x256xf32>
    %25 = arith.mulf %23, %24 : vector<8x256xf32>
    %26 = vector.extract_strided_slice %6 {offsets = [0, 1], sizes = [8, 256], strides = [1, 1]} : vector<8x290xf32> to vector<8x256xf32>
    %c1 = arith.constant 1 : index
    %c0_16 = arith.constant 0 : index
    %c0_17 = arith.constant 0 : index
    %27 = vector.load %arg2[%c1, %c0_16, %c0_17] : memref<9x8x1xf32, #tpu.memory_space<vmem>>, vector<1x8x1xf32>
    %28 = vector.shape_cast %27 : vector<1x8x1xf32> to vector<8x1xf32>
    %29 = vector.broadcast %28 : vector<8x1xf32> to vector<8x256xf32>
    %30 = arith.mulf %29, %26 : vector<8x256xf32>
    %c4 = arith.constant 4 : index
    %c0_18 = arith.constant 0 : index
    %c0_19 = arith.constant 0 : index
    %31 = vector.load %arg2[%c4, %c0_18, %c0_19] : memref<9x8x1xf32, #tpu.memory_space<vmem>>, vector<1x8x1xf32>
    %32 = vector.shape_cast %31 : vector<1x8x1xf32> to vector<8x1xf32>
    %33 = vector.broadcast %32 : vector<8x1xf32> to vector<8x256xf32>
    %34 = arith.mulf %33, %5 : vector<8x256xf32>
    %35 = arith.addf %30, %34 : vector<8x256xf32>
    %36 = vector.extract_strided_slice %6 {offsets = [0, 33], sizes = [8, 256], strides = [1, 1]} : vector<8x290xf32> to vector<8x256xf32>
    %c7 = arith.constant 7 : index
    %c0_20 = arith.constant 0 : index
    %c0_21 = arith.constant 0 : index
    %37 = vector.load %arg2[%c7, %c0_20, %c0_21] : memref<9x8x1xf32, #tpu.memory_space<vmem>>, vector<1x8x1xf32>
    %38 = vector.shape_cast %37 : vector<1x8x1xf32> to vector<8x1xf32>
    %39 = vector.broadcast %38 : vector<8x1xf32> to vector<8x256xf32>
    %40 = arith.mulf %39, %36 : vector<8x256xf32>
    %41 = arith.addf %35, %40 : vector<8x256xf32>
    %42 = arith.addf %25, %41 : vector<8x256xf32>
    %43 = vector.extract_strided_slice %6 {offsets = [0, 2], sizes = [8, 256], strides = [1, 1]} : vector<8x290xf32> to vector<8x256xf32>
    %c2 = arith.constant 2 : index
    %c0_22 = arith.constant 0 : index
    %c0_23 = arith.constant 0 : index
    %44 = vector.load %arg2[%c2, %c0_22, %c0_23] : memref<9x8x1xf32, #tpu.memory_space<vmem>>, vector<1x8x1xf32>
    %45 = vector.shape_cast %44 : vector<1x8x1xf32> to vector<8x1xf32>
    %46 = vector.broadcast %45 : vector<8x1xf32> to vector<8x256xf32>
    %47 = arith.mulf %46, %43 : vector<8x256xf32>
    %48 = vector.extract_strided_slice %6 {offsets = [0, 18], sizes = [8, 256], strides = [1, 1]} : vector<8x290xf32> to vector<8x256xf32>
    %c5 = arith.constant 5 : index
    %c0_24 = arith.constant 0 : index
    %c0_25 = arith.constant 0 : index
    %49 = vector.load %arg2[%c5, %c0_24, %c0_25] : memref<9x8x1xf32, #tpu.memory_space<vmem>>, vector<1x8x1xf32>
    %50 = vector.shape_cast %49 : vector<1x8x1xf32> to vector<8x1xf32>
    %51 = vector.broadcast %50 : vector<8x1xf32> to vector<8x256xf32>
    %52 = arith.mulf %51, %48 : vector<8x256xf32>
    %53 = arith.addf %47, %52 : vector<8x256xf32>
    %54 = vector.extract_strided_slice %6 {offsets = [0, 34], sizes = [8, 256], strides = [1, 1]} : vector<8x290xf32> to vector<8x256xf32>
    %c8 = arith.constant 8 : index
    %c0_26 = arith.constant 0 : index
    %c0_27 = arith.constant 0 : index
    %55 = vector.load %arg2[%c8, %c0_26, %c0_27] : memref<9x8x1xf32, #tpu.memory_space<vmem>>, vector<1x8x1xf32>
    %56 = vector.shape_cast %55 : vector<1x8x1xf32> to vector<8x1xf32>
    %57 = vector.broadcast %56 : vector<8x1xf32> to vector<8x256xf32>
    %58 = arith.mulf %57, %54 : vector<8x256xf32>
    %59 = arith.addf %53, %58 : vector<8x256xf32>
    %60 = vector.broadcast %2 : vector<1x256xf32> to vector<8x256xf32>
    %61 = arith.mulf %59, %60 : vector<8x256xf32>
    %62 = arith.addf %42, %61 : vector<8x256xf32>
    %63 = vector.broadcast %0 : vector<8x1xf32> to vector<8x256xf32>
    %64 = arith.addf %62, %63 : vector<8x256xf32>
    %cst_28 = arith.constant 0.000000e+00 : f32
    %65 = vector.broadcast %cst_28 : f32 to vector<8x256xf32>
    %66 = arith.maximumf %64, %65 : vector<8x256xf32>
    %c0_29 = arith.constant 0 : index
    %c0_30 = arith.constant 0 : index
    %67 = vector.load %arg5[%c0_29, %c0_30] : memref<4x1xf32, #tpu.memory_space<vmem>>, vector<4x1xf32>
    %c0_31 = arith.constant 0 : index
    %c0_32 = arith.constant 0 : index
    %c0_33 = arith.constant 0 : index
    %68 = vector.load %arg4[%c0_31, %c0_32, %c0_33] : memref<4x4x1xf32, #tpu.memory_space<vmem>>, vector<1x4x1xf32>
    %69 = vector.shape_cast %68 : vector<1x4x1xf32> to vector<4x1xf32>
    %70 = vector.extract_strided_slice %66 {offsets = [0, 0], sizes = [1, 256], strides = [1, 1]} : vector<8x256xf32> to vector<1x256xf32>
    %71 = vector.broadcast %69 : vector<4x1xf32> to vector<4x256xf32>
    %72 = vector.broadcast %70 : vector<1x256xf32> to vector<4x256xf32>
    %73 = arith.mulf %71, %72 : vector<4x256xf32>
    %c1_34 = arith.constant 1 : index
    %c0_35 = arith.constant 0 : index
    %c0_36 = arith.constant 0 : index
    %74 = vector.load %arg4[%c1_34, %c0_35, %c0_36] : memref<4x4x1xf32, #tpu.memory_space<vmem>>, vector<1x4x1xf32>
    %75 = vector.shape_cast %74 : vector<1x4x1xf32> to vector<4x1xf32>
    %76 = vector.extract_strided_slice %66 {offsets = [1, 0], sizes = [1, 256], strides = [1, 1]} : vector<8x256xf32> to vector<1x256xf32>
    %77 = vector.broadcast %75 : vector<4x1xf32> to vector<4x256xf32>
    %78 = vector.broadcast %76 : vector<1x256xf32> to vector<4x256xf32>
    %79 = arith.mulf %77, %78 : vector<4x256xf32>
    %80 = arith.addf %73, %79 : vector<4x256xf32>
    %c2_37 = arith.constant 2 : index
    %c0_38 = arith.constant 0 : index
    %c0_39 = arith.constant 0 : index
    %81 = vector.load %arg4[%c2_37, %c0_38, %c0_39] : memref<4x4x1xf32, #tpu.memory_space<vmem>>, vector<1x4x1xf32>
    %82 = vector.shape_cast %81 : vector<1x4x1xf32> to vector<4x1xf32>
    %83 = vector.extract_strided_slice %66 {offsets = [2, 0], sizes = [1, 256], strides = [1, 1]} : vector<8x256xf32> to vector<1x256xf32>
    %84 = vector.broadcast %82 : vector<4x1xf32> to vector<4x256xf32>
    %85 = vector.broadcast %83 : vector<1x256xf32> to vector<4x256xf32>
    %86 = arith.mulf %84, %85 : vector<4x256xf32>
    %87 = arith.addf %80, %86 : vector<4x256xf32>
    %c3_40 = arith.constant 3 : index
    %c0_41 = arith.constant 0 : index
    %c0_42 = arith.constant 0 : index
    %88 = vector.load %arg4[%c3_40, %c0_41, %c0_42] : memref<4x4x1xf32, #tpu.memory_space<vmem>>, vector<1x4x1xf32>
    %89 = vector.shape_cast %88 : vector<1x4x1xf32> to vector<4x1xf32>
    %90 = vector.extract_strided_slice %66 {offsets = [3, 0], sizes = [1, 256], strides = [1, 1]} : vector<8x256xf32> to vector<1x256xf32>
    %91 = vector.broadcast %89 : vector<4x1xf32> to vector<4x256xf32>
    %92 = vector.broadcast %90 : vector<1x256xf32> to vector<4x256xf32>
    %93 = arith.mulf %91, %92 : vector<4x256xf32>
    %94 = arith.addf %87, %93 : vector<4x256xf32>
    %95 = vector.broadcast %67 : vector<4x1xf32> to vector<4x256xf32>
    %96 = arith.addf %94, %95 : vector<4x256xf32>
    %c0_43 = arith.constant 0 : index
    %c0_44 = arith.constant 0 : index
    %c0_45 = arith.constant 0 : index
    %97 = vector.load %arg4[%c0_43, %c0_44, %c0_45] : memref<4x4x1xf32, #tpu.memory_space<vmem>>, vector<1x4x1xf32>
    %98 = vector.shape_cast %97 : vector<1x4x1xf32> to vector<4x1xf32>
    %99 = vector.extract_strided_slice %66 {offsets = [4, 0], sizes = [1, 256], strides = [1, 1]} : vector<8x256xf32> to vector<1x256xf32>
    %100 = vector.broadcast %98 : vector<4x1xf32> to vector<4x256xf32>
    %101 = vector.broadcast %99 : vector<1x256xf32> to vector<4x256xf32>
    %102 = arith.mulf %100, %101 : vector<4x256xf32>
    %c1_46 = arith.constant 1 : index
    %c0_47 = arith.constant 0 : index
    %c0_48 = arith.constant 0 : index
    %103 = vector.load %arg4[%c1_46, %c0_47, %c0_48] : memref<4x4x1xf32, #tpu.memory_space<vmem>>, vector<1x4x1xf32>
    %104 = vector.shape_cast %103 : vector<1x4x1xf32> to vector<4x1xf32>
    %105 = vector.extract_strided_slice %66 {offsets = [5, 0], sizes = [1, 256], strides = [1, 1]} : vector<8x256xf32> to vector<1x256xf32>
    %106 = vector.broadcast %104 : vector<4x1xf32> to vector<4x256xf32>
    %107 = vector.broadcast %105 : vector<1x256xf32> to vector<4x256xf32>
    %108 = arith.mulf %106, %107 : vector<4x256xf32>
    %109 = arith.addf %102, %108 : vector<4x256xf32>
    %c2_49 = arith.constant 2 : index
    %c0_50 = arith.constant 0 : index
    %c0_51 = arith.constant 0 : index
    %110 = vector.load %arg4[%c2_49, %c0_50, %c0_51] : memref<4x4x1xf32, #tpu.memory_space<vmem>>, vector<1x4x1xf32>
    %111 = vector.shape_cast %110 : vector<1x4x1xf32> to vector<4x1xf32>
    %112 = vector.extract_strided_slice %66 {offsets = [6, 0], sizes = [1, 256], strides = [1, 1]} : vector<8x256xf32> to vector<1x256xf32>
    %113 = vector.broadcast %111 : vector<4x1xf32> to vector<4x256xf32>
    %114 = vector.broadcast %112 : vector<1x256xf32> to vector<4x256xf32>
    %115 = arith.mulf %113, %114 : vector<4x256xf32>
    %116 = arith.addf %109, %115 : vector<4x256xf32>
    %c3_52 = arith.constant 3 : index
    %c0_53 = arith.constant 0 : index
    %c0_54 = arith.constant 0 : index
    %117 = vector.load %arg4[%c3_52, %c0_53, %c0_54] : memref<4x4x1xf32, #tpu.memory_space<vmem>>, vector<1x4x1xf32>
    %118 = vector.shape_cast %117 : vector<1x4x1xf32> to vector<4x1xf32>
    %119 = vector.extract_strided_slice %66 {offsets = [7, 0], sizes = [1, 256], strides = [1, 1]} : vector<8x256xf32> to vector<1x256xf32>
    %120 = vector.broadcast %118 : vector<4x1xf32> to vector<4x256xf32>
    %121 = vector.broadcast %119 : vector<1x256xf32> to vector<4x256xf32>
    %122 = arith.mulf %120, %121 : vector<4x256xf32>
    %123 = arith.addf %116, %122 : vector<4x256xf32>
    %124 = vector.broadcast %67 : vector<4x1xf32> to vector<4x256xf32>
    %125 = arith.addf %123, %124 : vector<4x256xf32>
    %126 = tpu.concatenate %96, %125 in 0 : vector<4x256xf32>, vector<4x256xf32> -> vector<8x256xf32>
    %c0_55 = arith.constant 0 : index
    %c0_56 = arith.constant 0 : index
    %c0_57 = arith.constant 0 : index
    %127 = vector.load %arg8[%c0_55, %c0_56, %c0_57] : memref<1x8x256xf32, #tpu.memory_space<vmem>>, vector<1x8x256xf32>
    %128 = vector.shape_cast %127 : vector<1x8x256xf32> to vector<8x256xf32>
    %129 = vector.shape_cast %126 : vector<8x256xf32> to vector<1x8x256xf32>
    tpu.vector_store %arg8[%c0_55, %c0_56, %c0_57], %129 {strides = array<i32>} : memref<1x8x256xf32, #tpu.memory_space<vmem>>, vector<1x8x256xf32>,
    return
  }
  func.func @transform_0(%arg0: i32) -> (i32, i32, i32, i32) {
    %c0_i32 = arith.constant 0 : i32
    %c0_i32_0 = arith.constant 0 : i32
    %c0_i32_1 = arith.constant 0 : i32
    %c0_i32_2 = arith.constant 0 : i32
    return %arg0, %c0_i32, %c0_i32_0, %c0_i32_1 : i32, i32, i32, i32
  }
  func.func @transform_1(%arg0: i32) -> (i32, i32, i32) {
    %c0_i32 = arith.constant 0 : i32
    %c0_i32_0 = arith.constant 0 : i32
    %c0_i32_1 = arith.constant 0 : i32
    %c0_i32_2 = arith.constant 0 : i32
    return %c0_i32, %c0_i32_0, %c0_i32_1 : i32, i32, i32
  }
  func.func @transform_2(%arg0: i32) -> (i32, i32) {
    %c0_i32 = arith.constant 0 : i32
    %c0_i32_0 = arith.constant 0 : i32
    %c0_i32_1 = arith.constant 0 : i32
    return %c0_i32, %c0_i32_0 : i32, i32
  }
  func.func @transform_3(%arg0: i32) -> (i32, i32, i32) {
    %c0_i32 = arith.constant 0 : i32
    %c0_i32_0 = arith.constant 0 : i32
    %c0_i32_1 = arith.constant 0 : i32
    %c0_i32_2 = arith.constant 0 : i32
    return %c0_i32, %c0_i32_0, %c0_i32_1 : i32, i32, i32
  }
  func.func @transform_4(%arg0: i32) -> (i32, i32) {
    %c0_i32 = arith.constant 0 : i32
    %c0_i32_0 = arith.constant 0 : i32
    %c0_i32_1 = arith.constant 0 : i32
    return %c0_i32, %c0_i32_0 : i32, i32
  }
  func.func @transform_5(%arg0: i32) -> (i32, i32) {
    %c0_i32 = arith.constant 0 : i32
    %c0_i32_0 = arith.constant 0 : i32
    %c0_i32_1 = arith.constant 0 : i32
    return %c0_i32, %c0_i32_0 : i32, i32
  }
  func.func @transform_6(%arg0: i32) -> (i32, i32) {
    %c0_i32 = arith.constant 0 : i32
    %c0_i32_0 = arith.constant 0 : i32
    %c0_i32_1 = arith.constant 0 : i32
    return %c0_i32, %c0_i32_0 : i32, i32
  }
  func.func @transform_7(%arg0: i32) -> (i32, i32, i32) {
    %c0_i32 = arith.constant 0 : i32
    %c0_i32_0 = arith.constant 0 : i32
    %c0_i32_1 = arith.constant 0 : i32
    return %arg0, %c0_i32, %c0_i32_0 : i32, i32, i32
  }
}

</mosaic_0001>

<bundles_post_ra>
// kernel: tpu_custom_call.1
= control target key start
LH: loop header
LB: loop body
LE: loop exit
PB: predicated region body
PF: predicated region fallthrough
CT: control target
= control target key end

     0   :  { %v449_v2 = vmov 0   ;;  %s450_s28 = smov 17   ;;  %s613_s0 = inlined_call_operand.vmem [shape: f32[1,1,8,256], index: 0, kind: input, shape index: {}]   ;;  %s614_s1 = inlined_call_operand.vmem [shape: f32[9,8,1], index: 1, kind: input, shape index: {}]   ;;  %s615_s2 = inlined_call_operand.vmem [shape: f32[8,1], index: 2, kind: input, shape index: {}]   ;;  %s616_s3 = inlined_call_operand.vmem [shape: f32[4,4,1], index: 3, kind: input, shape index: {}]   ;;  %s617_s4 = inlined_call_operand.vmem [shape: f32[4,1], index: 4, kind: input, shape index: {}]   ;;  %s618_s5 = inlined_call_operand.vmem [shape: f32[1,256], index: 5, kind: input, shape index: {}]   ;;  %s619_s6 = inlined_call_operand.vmem [shape: f32[1,256], index: 6, kind: input, shape index: {}]   ;;  %s620_s7 = inlined_call_operand.hbm [shape: f32[1,8,256], index: 7, kind: output, shape index: {}]  }
   0x1   :  { %v501_v0 = vld [vmem:[%s613_s0] sm:$0xff]  ;;  %420 = vset.pattern.permute.xlu1 %v449_v2  ;;  %421 = vset.pattern.permute.xlu0 %v449_v2  ;;  %v404_v3 = vld [vmem:[%s614_s1 + $0x38] sm:$0xff] }
   0x2   :  { %v45_v1 = vld [vmem:[%s614_s1] sm:$0xff]  ;;  %34 = vrot.lane.b32.xlu0 %v501_v0, %s450_s28  ;;  %422 = vset.pattern.permute.xlu2 %v449_v2 }
   0x3   :  { %48 = vperm.xlu1 %420, %v45_v1  }
   0x4   :  { %12 = vsyncpa [#allocation3], 0  ;;  %149 = vperm.xlu2 %422, %v404_v3   ;;  %v31_v4 = vld [vmem:[%s613_s0 + $0x8] sm:$0xff]  ;;  %v400_v5 = vld [vmem:[%s614_s1 + $0x18] sm:$0xff]  ;;  %vm38_vm0 = vcmask 138240   ;;  %s452_s23 = smov 1  }
   0x5   :  { %v403_v6 = vld [vmem:[%s614_s1 + $0x20] sm:$0xff]  ;;  %v406_v7 = vld [vmem:[%s614_s1 + $0x28] sm:$0xff]  ;;  %v401_v8 = vld [vmem:[%s614_s1 + $0x30] sm:$0xff]  ;;  %s453_s24 = smov 96   ;;  %s454_s27 = smov 2   ;;  %vm72_vm1 = vcmask 916480  }
   0x6   :  { %v407_v9 = vld [vmem:[%s614_s1 + $0x40] sm:$0xff]  ;;  %v402_v10 = vld [vmem:[%s614_s1 + $0x8] sm:$0xff]  ;;  %v405_v11 = vld [vmem:[%s614_s1 + $0x10] sm:$0xff]  ;;  %s451_s1 = smov 112   ;;  %vm98_vm2 = vcmask 785408   ;;  %vm137_vm3 = vcmask 7168  }
   0x7   :  { %v29_v41 = vld [vmem:[%s619_s6] sm:$0x3]  ;;  %s455_s6 = smov 127   ;;  %vm259_vm4 = vcmask 15360   ;;  %vm181_vm5 = vcmask 1039360   ;;  %vm276_vm6 = vcmask 1031168  }
   0x8   :  { %v253_v42 = vperm.slane %v29_v41, 0  ;;  %v254_v45 = vperm.slane %v29_v41, 1  ;;  %vm379_vm7 = vcmask 1043456   ;;  %s391_s19 = sshll.u32 %s620_s7, 4  ;;  %s392_s19 = int_to_ptr.hbm [resolvable:$true] %s391_s19 }
   0xa   :  { %36 = vrot.lane.b32.xlu0 %v31_v4, %s450_s28  ;;  %s456_s28 = smov 126  }
   0xb   :  { %57 = vperm.xlu1 %420, %v400_v5  }
  0x12   :  { %126 = vperm.xlu0 %421, %v403_v6  }
  0x13   :  { %202 = vperm.xlu1 %420, %v406_v7  }
  0x1a   :  { %83 = vperm.xlu0 %421, %v401_v8  }
  0x1b   :  { %229 = vperm.xlu1 %420, %v407_v9  }
  0x22   :  { %116 = vperm.xlu0 %421, %v402_v10  }
  0x23   :  { %192 = vperm.xlu1 %420, %v405_v11  }
  0x5e   :  { %v150_v30 = vpop.permute.xlu2 %149 }
  0x74   :  { %v35_v12 = vpop.permute.xlu0 %34 }
  0x75   :  { %v535_v13 = vsel %vm38_vm0, 0.0, %v35_v12  ;;  %v49_v14 = vpop.permute.xlu1 %48 }
  0x76   :  { %v51_v15 = vmul.f32 %v49_v14, %v535_v13  ;;  %v152_v35 = vmul.f32 %v150_v30, %v535_v13 }
  0x7c   :  { %v37_v16 = vpop.permute.xlu0 %36 }
  0x7d   :  { %v539_v17 = vsel %vm38_vm0, %v35_v12, %v37_v16  ;;  %v58_v18 = vpop.permute.xlu1 %57  ;;  %v547_v25 = vsel %vm38_vm0, %v37_v16, 0.0 }
  0x7e   :  { %v60_v19 = vmul.f32 %v58_v18, %v535_v13  ;;  %v52_v20 = vmul.f32 %v49_v14, %v539_v17  ;;  %v61_v23 = vmul.f32 %v58_v18, %v539_v17  ;;  %v62_v29 = vmul.f32 %v58_v18, %v547_v25 }
  0x7f   :  { %v154_v32 = vmul.f32 %v150_v30, %v547_v25  ;;  %v153_v43 = vmul.f32 %v150_v30, %v539_v17 }
  0x80   :  { %66 = vrot.lane.b32.xlu2 %v60_v19, %s451_s1 }
  0x84   :  { %v127_v21 = vpop.permute.xlu0 %126 }
  0x85   :  { %v130_v22 = vmul.f32 %v127_v21, %v31_v4  ;;  %v203_v24 = vpop.permute.xlu1 %202  ;;  %v129_v37 = vmul.f32 %v127_v21, %v501_v0 }
  0x86   :  { %v207_v27 = vmul.f32 %v203_v24, %v547_v25  ;;  %v205_v31 = vmul.f32 %v203_v24, %v535_v13  ;;  %v206_v40 = vmul.f32 %v203_v24, %v539_v17 }
  0x87   :  { %135 = vrot.lane.b32.xlu0 %v130_v22, %s452_s23 }
  0x88   :  { %68 = vrot.lane.b32.xlu2 %v61_v23, %s451_s1 }
  0x8c   :  { %v84_v26 = vpop.permute.xlu0 %83 }
  0x8d   :  { %v86_v28 = vmul.f32 %v84_v26, %v535_v13  ;;  %v87_v33 = vmul.f32 %v84_v26, %v539_v17  ;;  %v230_v34 = vpop.permute.xlu1 %229  ;;  %v88_v38 = vmul.f32 %v84_v26, %v547_v25 }
  0x8e   :  { %v234_v36 = vmul.f32 %v230_v34, %v547_v25  ;;  %v232_v39 = vmul.f32 %v230_v34, %v535_v13  ;;  %v233_v44 = vmul.f32 %v230_v34, %v539_v17 }
  0x8f   :  { %215 = vrot.lane.b32.xlu0 %v207_v27, %s451_s1  ;;  %92 = vrot.lane.b32.xlu1 %v86_v28, %s453_s24 }
  0x90   :  { %70 = vrot.lane.b32.xlu2 %v62_v29, %s451_s1 }
  0x94   :  { %v117_v53 = vpop.permute.xlu0 %116 }
  0x95   :  { %v193_v55 = vpop.permute.xlu1 %192  ;;  %v121_v63 = vmul.f32 %v117_v53, %v547_v25  ;;  %v120_v1 = vmul.f32 %v117_v53, %v539_v17  ;;  %v119_v10 = vmul.f32 %v117_v53, %v535_v13 }
  0x96   :  { %v197_v19 = vmul.f32 %v193_v55, %v547_v25  ;;  %v195_v30 = vmul.f32 %v193_v55, %v535_v13  ;;  %v408_v13 = vld [vmem:[%s616_s3 + $0x4] sm:$0xf] }
  0x97   :  { %162 = vrot.lane.b32.xlu0 %v154_v32, %s453_s24  ;;  %211 = vrot.lane.b32.xlu1 %v205_v31, %s451_s1  ;;  %v196_v32 = vmul.f32 %v193_v55, %v539_v17  ;;  %v27_v17 = vld [vmem:[%s615_s2] sm:$0xff] }
  0x98   :  { %94 = vrot.lane.b32.xlu2 %v87_v33, %s453_s24 }
  0x9f   :  { %242 = vrot.lane.b32.xlu0 %v234_v36, %s453_s24  ;;  %158 = vrot.lane.b32.xlu1 %v152_v35, %s453_s24 }
  0xa0   :  { %133 = vrot.lane.b32.xlu2 %v129_v37, %s452_s23 }
  0xa7   :  { %96 = vrot.lane.b32.xlu0 %v88_v38, %s453_s24  ;;  %238 = vrot.lane.b32.xlu1 %v232_v39, %s453_s24 }
  0xa8   :  { %213 = vrot.lane.b32.xlu2 %v206_v40, %s451_s1 }
  0xaf   :  { %255 = vrot.lane.b32.xlu1 %v253_v42, %s454_s27  ;;  %v292_v42 = vld [vmem:[%s617_s4] sm:$0xf] }
  0xb0   :  { %160 = vrot.lane.b32.xlu2 %v153_v43, %s453_s24  ;;  %v293_v43 = vld [vmem:[%s616_s3] sm:$0xf] }
  0xb8   :  { %240 = vrot.lane.b32.xlu2 %v233_v44, %s453_s24  ;;  %v409_v44 = vld [vmem:[%s616_s3 + $0x8] sm:$0xf] }
  0xc0   :  { %257 = vrot.lane.b32.xlu2 %v254_v45, %s454_s27  ;;  %v410_v45 = vld [vmem:[%s616_s3 + $0xc] sm:$0xf]  ;;  %s457_s3 = smov [#allocation2]  }
  0xda   :  { %v67_v46 = vpop.permute.xlu2 %66 }
  0xe2   :  { %v69_v47 = vpop.permute.xlu2 %68 }
  0xe3   :  { %v73_v48 = vsel %vm72_vm1, %v67_v46, %v69_v47 }
  0xe4   :  { %v77_v49 = vadd.f32 %v73_v48, %v51_v15 }
  0xea   :  { %v71_v50 = vpop.permute.xlu2 %70 }
  0xeb   :  { %v74_v51 = vsel %vm72_vm1, %v69_v47, %v71_v50 }
  0xec   :  { %v78_v52 = vadd.f32 %v74_v51, %v52_v20 }
  0xf2   :  { %v95_v54 = vpop.permute.xlu2 %94 }
  0xf9   :  { %v136_v56 = vpop.permute.xlu0 %135 }
  0xfa   :  { %v134_v57 = vpop.permute.xlu2 %133  ;;  %v144_v2 = vadd.f32 %v136_v56, %v121_v63 }
  0xfb   :  { %v138_v0 = vsel %vm137_vm3, %v134_v57, %v136_v56  ;;  %v142_v11 = vadd.f32 %v134_v57, %v119_v10 }
  0xfc   :  { %v143_v5 = vadd.f32 %v138_v0, %v120_v1 }
 0x101   :  { %v93_v58 = vpop.permute.xlu1 %92  ;;  %v216_v59 = vpop.permute.xlu0 %215 }
 0x102   :  { %v99_v60 = vsel %vm98_vm2, %v93_v58, %v95_v54  ;;  %v214_v61 = vpop.permute.xlu2 %213  ;;  %v224_v20 = vadd.f32 %v216_v59, %v197_v19 }
 0x103   :  { %v573_v62 = vadd.f32 %v99_v60, %v77_v49  ;;  %v218_v31 = vsel %vm72_vm1, %v214_v61, %v216_v59  ;;  %v28_v49 = vld [vmem:[%s618_s5] sm:$0x3]  ;;  %s389_s5 = sshll.u32 %s457_s3, 4  ;;  %s390_s5 = int_to_ptr.vmem [resolvable:$true] %s389_s5 }
 0x104   :  { %v223_v35 = vadd.f32 %v218_v31, %v196_v32  ;;  %v107_v50 = vperm.slane %v28_v49, 1  ;;  %v106_v51 = vperm.slane %v28_v49, 0 }
 0x106   :  { %v110_v58 = vmul.f32 %v106_v51, %v573_v62 }
 0x109   :  { %v212_v3 = vpop.permute.xlu1 %211  ;;  %v163_v4 = vpop.permute.xlu0 %162 }
 0x10a   :  { %v171_v6 = vadd.f32 %v163_v4, %v144_v2  ;;  %v161_v7 = vpop.permute.xlu2 %160  ;;  %v217_v27 = vsel %vm72_vm1, %v212_v3, %v214_v61 }
 0x10b   :  { %v165_v8 = vsel %vm98_vm2, %v161_v7, %v163_v4  ;;  %v222_v33 = vadd.f32 %v217_v27, %v195_v30 }
 0x10c   :  { %v170_v9 = vadd.f32 %v165_v8, %v143_v5  ;;  %179 = vrot.lane.b32.xlu0 %v171_v6, %s455_s6 }
 0x10e   :  { %177 = vrot.lane.b32.xlu2 %v170_v9, %s455_s6 }
 0x111   :  { %v159_v12 = vpop.permute.xlu1 %158  ;;  %v243_v14 = vpop.permute.xlu0 %242 }
 0x112   :  { %v164_v15 = vsel %vm98_vm2, %v159_v12, %v161_v7  ;;  %v241_v16 = vpop.permute.xlu2 %240  ;;  %v251_v21 = vadd.f32 %v243_v14, %v224_v20 }
 0x113   :  { %v169_v18 = vadd.f32 %v164_v15, %v142_v11  ;;  %v245_v34 = vsel %vm98_vm2, %v241_v16, %v243_v14 }
 0x114   :  { %v250_v37 = vadd.f32 %v245_v34, %v223_v35 }
 0x115   :  { %175 = vrot.lane.b32.xlu1 %v169_v18, %s455_s6 }
 0x119   :  { %v239_v22 = vpop.permute.xlu1 %238  ;;  %v97_v23 = vpop.permute.xlu0 %96 }
 0x11a   :  { %v100_v24 = vsel %vm98_vm2, %v95_v54, %v97_v23  ;;  %v258_v26 = vpop.permute.xlu2 %257  ;;  %v244_v25 = vsel %vm98_vm2, %v239_v22, %v241_v16 }
 0x11b   :  { %v104_v28 = vadd.f32 %v100_v24, %v78_v52  ;;  %v266_v29 = vmul.f32 %v258_v26, %v251_v21  ;;  %v249_v36 = vadd.f32 %v244_v25, %v222_v33 }
 0x11d   :  { %274 = vrot.lane.b32.xlu0 %v266_v29, %s456_s28  ;;  %v111_v57 = vmul.f32 %v107_v50, %v104_v28 }
 0x121   :  { %v256_v38 = vpop.permute.xlu1 %255 }
 0x122   :  { %v260_v39 = vsel %vm259_vm4, %v256_v38, %v258_v26  ;;  %v264_v40 = vmul.f32 %v256_v38, %v249_v36 }
 0x123   :  { %v265_v41 = vmul.f32 %v260_v39, %v250_v37 }
 0x124   :  { %270 = vrot.lane.b32.xlu1 %v264_v40, %s456_s28 }
 0x125   :  { %307 = vperm.xlu0 %421, %v408_v13   ;;  %272 = vrot.lane.b32.xlu2 %v265_v41, %s456_s28 }
 0x12c   :  { %285 = vperm.xlu1 %420, %v27_v17  }
 0x12d   :  { %344 = vperm.xlu0 %421, %v292_v42   ;;  %296 = vperm.xlu2 %422, %v293_v43  }
 0x134   :  { %320 = vperm.xlu1 %420, %v409_v44  }
 0x135   :  { %333 = vperm.xlu2 %422, %v410_v45  }
 0x168   :  { %v178_v47 = vpop.permute.xlu2 %177 }
 0x17e   :  { %v180_v48 = vpop.permute.xlu0 %179 }
 0x17f   :  { %v273_v53 = vpop.permute.xlu2 %272  ;;  %v183_v55 = vsel %vm181_vm5, %v178_v47, %v180_v48 }
 0x180   :  { %v187_v61 = vadd.f32 %v183_v55, %v111_v57 }
 0x187   :  { %v176_v46 = vpop.permute.xlu1 %175  ;;  %v297_v5 = vpop.permute.xlu2 %296 }
 0x188   :  { %v182_v56 = vsel %vm181_vm5, %v176_v46, %v178_v47 }
 0x189   :  { %v186_v63 = vadd.f32 %v182_v56, %v110_v58 }
 0x18f   :  { %v275_v54 = vpop.permute.xlu0 %274  ;;  %v334_v13 = vpop.permute.xlu2 %333 }
 0x190   :  { %v278_v59 = vsel %vm276_vm6, %v273_v53, %v275_v54 }
 0x191   :  { %v282_v0 = vadd.f32 %v278_v59, %v187_v61 }
 0x196   :  { %v271_v52 = vpop.permute.xlu1 %270 }
 0x197   :  { %v277_v60 = vsel %vm276_vm6, %v271_v52, %v273_v53  ;;  %v308_v12 = vpop.permute.xlu0 %307 }
 0x198   :  { %v281_v1 = vadd.f32 %v277_v60, %v186_v63 }
 0x19e   :  { %v286_v2 = vpop.permute.xlu1 %285 }
 0x19f   :  { %v288_v3 = vadd.f32 %v286_v2, %v281_v1  ;;  %v289_v4 = vadd.f32 %v286_v2, %v282_v0  ;;  %v345_v54 = vpop.permute.xlu0 %344 }
 0x1a1   :  { %v290_v6 = vmax.f32 %v288_v3, 0.0  ;;  %v291_v7 = vmax.f32 %v289_v4, 0.0 }
 0x1a3   :  { %v299_v8 = vperm.slane %v290_v6, 0  ;;  %v300_v9 = vperm.slane %v291_v7, 0  ;;  %v310_v10 = vperm.slane %v290_v6, 1  ;;  %v311_v11 = vperm.slane %v291_v7, 1 }
 0x1a4   :  { %v323_v14 = vperm.slane %v290_v6, 2  ;;  %v324_v15 = vperm.slane %v291_v7, 2  ;;  %v336_v20 = vperm.slane %v290_v6, 3  ;;  %v337_v21 = vperm.slane %v291_v7, 3 }
 0x1a5   :  { %v301_v62 = vmul.f32 %v299_v8, %v297_v5  ;;  %v302_v16 = vmul.f32 %v300_v9, %v297_v5  ;;  %v312_v18 = vmul.f32 %v310_v10, %v308_v12  ;;  %v313_v19 = vmul.f32 %v311_v11, %v308_v12 }
 0x1a6   :  { %v349_v22 = vperm.slane %v290_v6, 4  ;;  %v350_v23 = vperm.slane %v291_v7, 4  ;;  %v353_v27 = vperm.slane %v290_v6, 5  ;;  %v354_v28 = vperm.slane %v291_v7, 5  ;;  %v321_v29 = vpop.permute.xlu1 %320 }
 0x1a7   :  { %v314_v24 = vadd.f32 %v312_v18, %v301_v62  ;;  %v315_v26 = vadd.f32 %v313_v19, %v302_v16  ;;  %v359_v32 = vperm.slane %v290_v6, 6  ;;  %v360_v25 = vperm.slane %v291_v7, 6 }
 0x1a8   :  { %v351_v30 = vmul.f32 %v349_v22, %v297_v5  ;;  %v352_v31 = vmul.f32 %v350_v23, %v297_v5  ;;  %v355_v33 = vmul.f32 %v353_v27, %v308_v12  ;;  %v356_v34 = vmul.f32 %v354_v28, %v308_v12 }
 0x1a9   :  { %v365_v35 = vperm.slane %v290_v6, 7  ;;  %v366_v36 = vperm.slane %v291_v7, 7  ;;  %v325_v37 = vmul.f32 %v323_v14, %v321_v29  ;;  %v326_v38 = vmul.f32 %v324_v15, %v321_v29 }
 0x1aa   :  { %v361_v39 = vmul.f32 %v359_v32, %v321_v29  ;;  %v362_v40 = vmul.f32 %v360_v25, %v321_v29  ;;  %v357_v41 = vadd.f32 %v355_v33, %v351_v30  ;;  %v358_v17 = vadd.f32 %v356_v34, %v352_v31 }
 0x1ab   :  { %v338_v42 = vmul.f32 %v336_v20, %v334_v13  ;;  %v339_v43 = vmul.f32 %v337_v21, %v334_v13  ;;  %v327_v44 = vadd.f32 %v325_v37, %v314_v24  ;;  %v328_v45 = vadd.f32 %v326_v38, %v315_v26 }
 0x1ac   :  { %v367_v46 = vmul.f32 %v365_v35, %v334_v13  ;;  %v368_v47 = vmul.f32 %v366_v36, %v334_v13  ;;  %v363_v48 = vadd.f32 %v361_v39, %v357_v41  ;;  %v364_v49 = vadd.f32 %v362_v40, %v358_v17 }
 0x1ad   :  { %v340_v50 = vadd.f32 %v338_v42, %v327_v44  ;;  %v341_v51 = vadd.f32 %v339_v43, %v328_v45 }
 0x1ae   :  { %v369_v52 = vadd.f32 %v367_v46, %v363_v48  ;;  %v370_v53 = vadd.f32 %v368_v47, %v364_v49 }
 0x1af   :  { %v347_v57 = vadd.f32 %v345_v54, %v340_v50  ;;  %v348_v58 = vadd.f32 %v345_v54, %v341_v51 }
 0x1b0   :  { %v371_v55 = vadd.f32 %v369_v52, %v345_v54  ;;  %v372_v56 = vadd.f32 %v370_v53, %v345_v54 }
 0x1b2   :  { %v375_v59 = vrot.slane %v371_v55, 4  ;;  %v376_v60 = vrot.slane %v372_v56, 4 }
 0x1b4   :  { %v380_v61 = vsel %vm379_vm7, %v347_v57, %v375_v59  ;;  %v381_v63 = vsel %vm379_vm7, %v348_v58, %v376_v60 }
 0x1b5   :  { %382 = vst [vmem:[#allocation2] sm:$0xff] %v380_v61 }
 0x1b6   :  { %383 = vst [vmem:[#allocation2 + $0x8] sm:$0xff] %v381_v63 }
 0x1b7   :  { %394 = dma.vmem_to_hbm [thread:$0]  %s390_s5, 256, %s392_s19, [#allocation3]  }
 0x1b8   :  { %447 = dma.done.wait [#allocation3], 256  }
 0x1b9   :  { %448 = vsyncadd [#allocation3], 4294967040 }
 0x1ba   :  { %399 = vsyncpa [#allocation3], 1 }

</bundles_post_ra>
